<compile_context>
chip_gen: v7x
topology: tpu7x:2x2x1
jax: 0.10.0
libtpu: 0.0.40
codegen_flags: <defaults>
</compile_context>

<pallas_src>
import jax
import jax.numpy as jnp
from jax.experimental import pallas as pl
from jax.experimental.pallas import tpu as pltpu


def _round_up(a, m):
    return (a + m - 1) // m * m


def _largest_tile(seq_pad, tile_max):
    """Largest multiple-of-16 divisor of seq_pad that is <= tile_max."""
    best = 16
    for cand in range(16, min(tile_max, seq_pad) + 1, 16):
        if seq_pad % cand == 0:
            best = cand
    return best


def _patch_embed_kernel(patches_ref, w_ref, add_ref, out_ref):
    # patches_ref: (tile, k_pad)  bf16  VMEM (streamed)
    # w_ref      : (k_pad, dim)   bf16  VMEM (resident: constant index map)
    # add_ref    : (tile, dim)    bf16  VMEM (resident along the inner batch axis)
    # out_ref    : (tile, dim)          VMEM
    proj = jnp.dot(patches_ref[...], w_ref[...],
                   preferred_element_type=jnp.float32)   # MXU, f32 accumulate
    out_ref[...] = (proj + add_ref[...].astype(jnp.float32)).astype(out_ref.dtype)


def patch_embedding(x, conv_weight, class_token, pos_emb, patch_size, *,
                    compute_dtype=jnp.bfloat16, out_dtype=None,
                    tile_rows_max=512):
    """ViT patch embedding (Conv2d(P,P,stride=P,no-bias) + [CLS] + pos emb).

    Args:
      x:            (B, C, H, W) image, NCHW as in PyTorch.
      conv_weight:  (dim, C, P, P) Conv2d weight (no bias).
      class_token:  (1, 1, dim).
      pos_emb:      (n_patches + 1, dim).
      patch_size:   P.
      out_dtype:    defaults to x.dtype; pass jnp.bfloat16 if the downstream
                    transformer runs in bf16 (halves output writeback bytes).
    Returns:
      (B, n_patches + 1, dim) embeddings.
    """
    B, C, H, W = x.shape
    P = patch_size
    assert H % P == 0 and W % P == 0, "image size must be divisible by patch size"
    hp, wp = H // P, W // P
    n_patches = hp * wp
    seq = n_patches + 1                      # class token + patches
    dim = conv_weight.shape[0]
    patch_dim = C * P * P
    out_dtype = x.dtype if out_dtype is None else out_dtype

    # --- K (reduction / lane) axis: zero-pad ragged K to a multiple of 128
    #     when it is large enough that the relative overhead is small. Exact.
    if patch_dim >= 128 and patch_dim % 128 != 0:
        k_pad = _round_up(patch_dim, 128)
    else:
        k_pad = patch_dim

    # --- sequence (rows) axis: pad to a multiple of 16 (bf16 sublane packing)
    #     and tile with the largest <= tile_rows_max multiple-of-16 divisor.
    seq_pad = _round_up(seq, 16)
    tile = _largest_tile(seq_pad, tile_rows_max)
    n_tiles = seq_pad // tile
    if B * n_tiles < 2 and seq > 16:
        # v7x has 2 TensorCores per chip: guarantee >= 2 parallel grid points.
        seq_pad = _round_up(seq, 32)
        tile = seq_pad // 2
        n_tiles = 2

    # --- patchify (XLA glue, candidate for input fusion into the pallas call).
    #     Row 0 of every image is an all-zero "patch": its projection is 0, so
    #     adding (class_token + pos_emb[0]) in-kernel yields the class-token
    #     row in place — no concatenate afterwards. Matches the conv's
    #     (c, kh, kw) reduction order and einops 'b d h w -> b (h w) d'.
    patches = x.reshape(B, C, hp, P, wp, P).transpose(0, 2, 4, 1, 3, 5)
    patches = patches.reshape(B, n_patches, patch_dim)
    patches = jnp.pad(patches,
                      ((0, 0), (1, seq_pad - seq), (0, k_pad - patch_dim)))
    patches_2d = patches.reshape(B * seq_pad, k_pad).astype(compute_dtype)

    # --- flattened conv weight (fully resident in VMEM), zero-padded K rows.
    w_flat = jnp.transpose(conv_weight.reshape(dim, patch_dim))   # (patch_dim, dim)
    if k_pad != patch_dim:
        w_flat = jnp.pad(w_flat, ((0, k_pad - patch_dim), (0, 0)))
    w_flat = w_flat.astype(compute_dtype)

    # --- additive table: row 0 = class_token + pos_emb[0]; rows 1.. = pos_emb[1:].
    #     Streamed in bf16 (halves DMA + VMEM), upcast and added in f32 in-kernel.
    add = pos_emb.at[0].add(class_token.reshape(dim))
    add = jnp.pad(add, ((0, seq_pad - seq), (0, 0))).astype(compute_dtype)

    cd_bytes = jnp.dtype(compute_dtype).itemsize
    ob_bytes = jnp.dtype(out_dtype).itemsize
    flops = 2 * B * seq_pad * k_pad * dim
    bytes_accessed = (B * seq_pad * k_pad * cd_bytes     # patches: read once
                      + k_pad * dim * cd_bytes           # weight: resident
                      + seq_pad * dim * cd_bytes         # additive table: read once
                      + B * seq_pad * dim * ob_bytes)    # output writeback

    grid = (n_tiles, B)   # batch innermost -> additive block resident across it

    out = pl.pallas_call(
        _patch_embed_kernel,
        out_shape=jax.ShapeDtypeStruct((B * seq_pad, dim), out_dtype),
        grid_spec=pltpu.PrefetchScalarGridSpec(
            num_scalar_prefetch=0,
            grid=grid,
            in_specs=[
                pl.BlockSpec((tile, k_pad), lambda n, b: (b * n_tiles + n, 0)),
                pl.BlockSpec((k_pad, dim), lambda n, b: (0, 0)),
                pl.BlockSpec((tile, dim), lambda n, b: (n, 0)),
            ],
            out_specs=pl.BlockSpec((tile, dim),
                                   lambda n, b: (b * n_tiles + n, 0)),
        ),
        compiler_params=pltpu.CompilerParams(
            dimension_semantics=("parallel", "parallel"),
            # 32 MiB: above v5e's 16 MiB default, equal to the v6e/v7x default,
            # and comfortably above what this tiling needs (<~12 MiB worst case).
            vmem_limit_bytes=32 * 1024 * 1024,
            # Allow XLA to fuse the patchify transpose + bf16 cast into the
            # pallas input DMA instead of materializing patches_2d in HBM.
            allow_input_fusion=[True, False, False],
        ),
        cost_estimate=pl.CostEstimate(flops=flops, transcendentals=0,
                                      bytes_accessed=bytes_accessed),
    )(patches_2d, w_flat, add)

    # (B, seq, dim). Row 0 is the class-token row; the trailing-pad slice is a
    # view-like slice that fuses into downstream consumers (no concat pass).
    return out.reshape(B, seq_pad, dim)[:, :seq, :]


def _reference(x, conv_weight, class_token, pos_emb, patch_size):
    """Pure-JAX f32 reference mirroring the PyTorch forward."""
    B, C, H, W = x.shape
    P = patch_size
    hp, wp = H // P, W // P
    dim = conv_weight.shape[0]
    patches = x.reshape(B, C, hp, P, wp, P).transpose(0, 2, 4, 1, 3, 5)
    patches = patches.reshape(B, hp * wp, C * P * P)
    proj = jnp.einsum("bnp,dp->bnd", patches, conv_weight.reshape(dim, -1))
    cls = jnp.broadcast_to(class_token, (B, 1, dim))
    out = jnp.concatenate([cls, proj], axis=1)
    return out + pos_emb[None]


if __name__ == "__main__":
    # Small config consistent with the module's forward.
    image_size, patch_size, in_channels, dim = 16, 4, 4, 32
    batch = 2
    n_patches = (image_size // patch_size) ** 2

    key = jax.random.PRNGKey(0)
    kx, kw, kc, kp = jax.random.split(key, 4)

    x = jax.random.normal(kx, (batch, in_channels, image_size, image_size),
                          dtype=jnp.float32)
    conv_weight = jax.random.normal(
        kw, (dim, in_channels, patch_size, patch_size), dtype=jnp.float32) * 0.02
    class_token = jax.random.normal(kc, (1, 1, dim), dtype=jnp.float32)
    pos_emb = jax.random.normal(kp, (n_patches + 1, dim), dtype=jnp.float32)

    fwd = jax.jit(lambda a, w, c, p: patch_embedding(a, w, c, p, patch_size))
    out = jax.block_until_ready(fwd(x, conv_weight, class_token, pos_emb))

    ref = _reference(x, conv_weight, class_token, pos_emb, patch_size)
    assert out.shape == (batch, n_patches + 1, dim), out.shape
    # bf16 MXU inputs + bf16-streamed pos table with f32 accumulation/add ->
    # loosened tolerance vs the f32 reference.
    assert jnp.allclose(out, ref, atol=2e-2, rtol=2e-2), float(
        jnp.max(jnp.abs(out - ref)))

    print("KERNEL_OK")
</pallas_src>

<mosaic_0001>
module attributes {stable_mosaic.version = 11 : i64} {
  func.func @_patch_embed_kernel(%arg0: i32, %arg1: i32, %arg2: memref<32x64xbf16, #tpu.memory_space<vmem>>, %arg3: memref<64x32xbf16, #tpu.memory_space<vmem>>, %arg4: memref<32x32xbf16, #tpu.memory_space<vmem>>, %arg5: memref<32x32xf32, #tpu.memory_space<vmem>>) attributes {dimension_semantics = [#tpu.dimension_semantics<parallel>, #tpu.dimension_semantics<parallel>], iteration_bounds = array<i64: 1, 2>, scalar_prefetch = 0 : i64, scratch_operands = 0 : i64, tpu.core_type = #tpu.core_type<tc>, window_params = [{transform_indices = @transform_0, window_bounds = array<i64: 32, 64>}, {pipeline_mode = #tpu.pipeline_mode<synchronous>, transform_indices = @transform_1, window_bounds = array<i64: 64, 32>}, {transform_indices = @transform_2, window_bounds = array<i64: 32, 32>}, {transform_indices = @transform_3, window_bounds = array<i64: 32, 32>}]} {
    %c0 = arith.constant 0 : index
    %c0_0 = arith.constant 0 : index
    %0 = vector.load %arg2[%c0, %c0_0] : memref<32x64xbf16, #tpu.memory_space<vmem>>, vector<32x64xbf16>
    %c0_1 = arith.constant 0 : index
    %c0_2 = arith.constant 0 : index
    %1 = vector.load %arg3[%c0_1, %c0_2] : memref<64x32xbf16, #tpu.memory_space<vmem>>, vector<64x32xbf16>
    %cst = arith.constant dense<0.000000e+00> : vector<32x32xf32>
    %2 = tpu.matmul %0, %1, %cst {dimension_numbers = #tpu.dot_dimension_numbers<[1], [0], [0], [1], [0, 0, 1, 1], [], []>} : vector<32x64xbf16>, vector<64x32xbf16>, vector<32x32xf32> -> vector<32x32xf32>
    %c0_3 = arith.constant 0 : index
    %c0_4 = arith.constant 0 : index
    %3 = vector.load %arg4[%c0_3, %c0_4] : memref<32x32xbf16, #tpu.memory_space<vmem>>, vector<32x32xbf16>
    %4 = arith.extf %3 : vector<32x32xbf16> to vector<32x32xf32>
    %5 = arith.addf %2, %4 : vector<32x32xf32>
    %c0_5 = arith.constant 0 : index
    %c0_6 = arith.constant 0 : index
    %6 = vector.load %arg5[%c0_5, %c0_6] : memref<32x32xf32, #tpu.memory_space<vmem>>, vector<32x32xf32>
    tpu.vector_store %arg5[%c0_5, %c0_6], %5 {strides = array<i32>} : memref<32x32xf32, #tpu.memory_space<vmem>>, vector<32x32xf32>,
    return
  }
  func.func @transform_0(%arg0: i32, %arg1: i32) -> (i32, i32) {
    %c1_i32 = arith.constant 1 : i32
    %0 = arith.muli %arg1, %c1_i32 : i32
    %1 = arith.addi %0, %arg0 : i32
    %c0_i32 = arith.constant 0 : i32
    %c0_i32_0 = arith.constant 0 : i32
    return %1, %c0_i32 : i32, i32
  }
  func.func @transform_1(%arg0: i32, %arg1: i32) -> (i32, i32) {
    %c0_i32 = arith.constant 0 : i32
    %c0_i32_0 = arith.constant 0 : i32
    %c0_i32_1 = arith.constant 0 : i32
    return %c0_i32, %c0_i32_0 : i32, i32
  }
  func.func @transform_2(%arg0: i32, %arg1: i32) -> (i32, i32) {
    %c0_i32 = arith.constant 0 : i32
    %c0_i32_0 = arith.constant 0 : i32
    return %arg0, %c0_i32 : i32, i32
  }
  func.func @transform_3(%arg0: i32, %arg1: i32) -> (i32, i32) {
    %c1_i32 = arith.constant 1 : i32
    %0 = arith.muli %arg1, %c1_i32 : i32
    %1 = arith.addi %0, %arg0 : i32
    %c0_i32 = arith.constant 0 : i32
    %c0_i32_0 = arith.constant 0 : i32
    return %1, %c0_i32 : i32, i32
  }
}

</mosaic_0001>

<bundles_post_ra>
// kernel: _lambda_.1
= control target key start
LH: loop header
LB: loop body
LE: loop exit
PB: predicated region body
PF: predicated region fallthrough
CT: control target
= control target key end

     0   :  { %s540_s12 = smov 0   ;;  %s542_s13 = smov 0   ;;  %s591_s0 = inlined_call_operand.vmem [shape: bf16[64,64], index: 0, kind: input, shape index: {}]   ;;  %s592_s1 = inlined_call_operand.vmem [shape: bf16[64,32], index: 1, kind: input, shape index: {}]   ;;  %s593_s2 = inlined_call_operand.vmem [shape: bf16[32,32], index: 2, kind: input, shape index: {}]   ;;  %s594_s3 = inlined_call_operand.vmem [shape: f32[64,32], index: 3, kind: output, shape index: {}]  }
   0x1   :  { %s544_s14 = smov 0  }
   0x2 LB: > { %s22_s15 = sadd.s32 1, %s514_s13  ;;  %p424_p0 = scmp.ge.s32.totalorder %s518_s14, 1  ;;  %s518_s14 = sphi %s544_s14, %s13_s14   ;;  %s514_s13 = sphi %s542_s13, %s596_s13   ;;  %s510_s12 = sphi %s540_s12, %s595_s12  }
   0x3   : > { %p23_p1 = scmp.ge.s32.totalorder %s22_s15, 2  ;;  %p167_p2 = scmp.lt.s32.totalorder %s518_s14, 3 }
   0x5   : > { %s598_s15 = smov (%p23_p1, %s22_s15), 0  ;;  %p168_p3 = pnand %p424_p0, %p167_p2 }
   0x6   : > { %v490_v0 = vld [vmem:[%s592_s1] sm:$0xff] (!%p168_p3)   ;;  %s425_s18 = sshll.u32 (!%p168_p3), %s510_s12, 2  ;;  %v491_v1 = vld [vmem:[%s592_s1 + $0x8] sm:$0xff] (!%p168_p3)   ;;  %v492_v2 = vld [vmem:[%s592_s1 + $0x10] sm:$0xff] (!%p168_p3)   ;;  %vm275_vm0 = vcmask (!%p168_p3), 523264   ;;  %vm331_vm1 = vcmask (!%p168_p3), 261120  }
   0x7   : > { %171 = sbr.rel (%p168_p3) target bundleno = 241 (0xf1), region = 32  ;;  %p200_p4 = scmp.lt.s32.totalorder (!%p168_p3), %s425_s18, 7  ;;  %454 = vmatprep.subr.bf16.mxu0 (!%p168_p3), %v490_v0  ;;  %v493_v4 = vld [vmem:[%s592_s1 + $0x18] sm:$0xff] (!%p168_p3)   ;;  %v440_v6 = vld [vmem:[%s593_s2] sm:$0xff] (!%p168_p3)   ;;  %v447_v7 = vld [vmem:[%s593_s2 + $0x8] sm:$0xff] (!%p168_p3)  }
   0x8   : > { %455 = vmatpush3.bf16.msra.mxu0 (!%p168_p3), %v490_v0  ;;  %v441_v8 = vunpack.c.l.bf16 (!%p168_p3), %v440_v6  ;;  %v442_v10 = vunpack.c.h.bf16 (!%p168_p3), %v440_v6  ;;  %v445_v11 = vunpack.c.l.bf16 (!%p168_p3), %v447_v7  ;;  %v446_v14 = vunpack.c.h.bf16 (!%p168_p3), %v447_v7 }
   0x9   : > { %456 = vmatprep.subr.bf16.mxu0 (!%p168_p3), %v491_v1 }
   0xc   : > { %457 = vmatpush3.bf16.msra.mxu0 (!%p168_p3), %v491_v1 }
   0xd   : > { %458 = vmatprep.subr.bf16.mxu0 (!%p168_p3), %v492_v2 }
   0xe   : > { %s600_s18 = smov (!%p200_p4, %s425_s18), 7 }
   0xf   : > { %s426_s23 = sshll.u32 %s600_s18, 2  ;;  %s428_s6 = sshll.u32 %s600_s18, 3 }
  0x10   : > { %s203_s26 = scalar_lea.vmem %s591_s0, %s426_s23  ;;  %459 = vmatpush3.bf16.msra.mxu0 %v492_v2  ;;  %s217_s9 = scalar_lea.vmem %s594_s3, %s428_s6 }
  0x11   : > { %v494_v3 = vld [vmem:[%s203_s26] sm:$0xff]   ;;  %460 = vmatprep.subr.bf16.mxu0 %v493_v4  ;;  %v495_v5 = vld [vmem:[%s203_s26 + $0x8] sm:$0xff]  }
  0x12   : > { %462 = vmatprep.mubr.msk.bf16.mxu0 %vm275_vm0, %v494_v3 }
  0x14   : > { %461 = vmatpush3.bf16.msra.mxu0 %v493_v4 }
  0x17   : > { %463 = vmatmul.mubr.msk.bf16.vlgmr.msra.gmra.mrb[0].mxu0 %vm275_vm0, %v495_v5 }
  0xea   : > { %v464_v9 = vpop.f32.mrb[0].mxu0 }
  0xeb   : > { %v316_v12 = vpop.f32.mrb[1].mxu0  ;;  %v325_v18 = vadd.f32 %v464_v9, %v445_v11 }
  0xec   : > { %v317_v13 = vadd.f32 %v441_v8, %v316_v12  ;;  %v465_v15 = vpop.f32.mrb[2].mxu0 }
  0xed   : > { %v319_v16 = vpop.f32.mrb[3].mxu0  ;;  %v328_v19 = vadd.f32 %v465_v15, %v446_v14  ;;  %334 = vst.msk [vmem:[%s217_s9 + $0x10] sm:$0xff] %vm331_vm1, %v325_v18 }
  0xee   : > { %332 = vst.msk [vmem:[%s217_s9] sm:$0xff] %vm331_vm1, %v317_v13  ;;  %v320_v17 = vadd.f32 %v442_v10, %v319_v16 }
  0xef   : > { %335 = vst.msk [vmem:[%s217_s9 + $0x18] sm:$0xff] %vm331_vm1, %v328_v19 }
  0xf0   : > { %333 = vst.msk [vmem:[%s217_s9 + $0x8] sm:$0xff] %vm331_vm1, %v320_v17 }
  0xf1 PF: > { %s13_s14 = sadd.s32 1, %s518_s14   ;;  %s595_s12 = smov %s514_s13 }
  0xf2   : > { %p10_p5 = scmp.ge.s32.totalorder %s13_s14, 4   ;;  %s596_s13 = smov %s598_s15 }
  0xf4   :  { %12 = sbr.rel (!%p10_p5) target bundleno = 2 (0x2), region = 65 }

</bundles_post_ra>
